<compile_context>
chip_gen: v5e
topology: v5e:2x2
jax: 0.10.0
libtpu: 0.0.40
codegen_flags: <defaults>
</compile_context>

<pallas_src>
import functools

import jax
import jax.numpy as jnp
import numpy as np
from jax.experimental import pallas as pl
from jax.experimental.pallas import tpu as pltpu


def _round_up(v: int, m: int) -> int:
    return (v + m - 1) // m * m


def _vmem_budget_bytes() -> int:
    """Physical VMEM capacity minus headroom, capped at 100 MiB (v5e/v6e)."""
    phys = 64 * 2**20  # conservative fallback = v7x per-TC VMEM
    info_fn = getattr(pltpu, "get_tpu_info", None)
    if info_fn is not None:
        try:
            phys = int(info_fn().vmem_capacity_bytes)
        except Exception:
            pass
    return int(min(100 * 2**20, phys - 8 * 2**20))


def _pick_expert_tile(D: int) -> int:
    """D-chunk size for the expert-weight blocks (lane-aligned when tiled)."""
    if D <= 512:
        return D
    for dk in (512, 384, 256, 128):
        if D % dk == 0:
            return dk
    return D


def _vmem_bytes_est(tm: int, H: int, dk: int) -> int:
    # double-buffered inputs (x bf16, W1 bf16, W2 bf16, dw f32)
    blk_in = tm * H * 2 + 2 * H * dk * 2 + dk * H * 2 + tm * 4
    # + double-buffered bf16 output + f32 scratch accumulator
    return 2 * blk_in + 2 * tm * H * 2 + tm * H * 4


# ----------------------------------------------------------------------------
# Pallas kernel: fused routed + shared expert FFN with weighted accumulation.
# Grid = (token_tiles, n_experts_total(compacted), D_tiles); expert and D axes
# are the reduction axes into a resident f32 accumulator.
# ----------------------------------------------------------------------------
def _moe_ffn_kernel(nact_ref,    # SMEM (1,)     int32  (# active experts)
                    aid_ref,     # SMEM (E_tot,) int32  (compacted expert ids)
                    x_ref,       # VMEM (tm, H)       bf16
                    w1_ref,      # VMEM (1, 2, H, dk) bf16  [gate ; up]
                    w2_ref,      # VMEM (1, dk, H)    bf16
                    dw_ref,      # VMEM (1, tm, 1)    f32   routing weight
                    out_ref,     # VMEM (tm, H)       bf16
                    acc_ref):    # VMEM (tm, H)       f32   scratch accumulator
    e = pl.program_id(1)
    d = pl.program_id(2)

    @pl.when((e == 0) & (d == 0))
    def _init():
        acc_ref[...] = jnp.zeros_like(acc_ref)

    # Only the first n_active grid slots carry real experts; trailing slots
    # repeat the last active expert's block index (DMA elided) and skip work.
    @pl.when(e < nact_ref[0])
    def _ffn():
        x = x_ref[...]                                        # (tm, H) bf16
        gate = jnp.dot(x, w1_ref[0, 0],
                       preferred_element_type=jnp.float32)    # (tm, dk) f32
        up = jnp.dot(x, w1_ref[0, 1],
                     preferred_element_type=jnp.float32)      # (tm, dk) f32
        # Single-transcendental sigmoid (exact): one EUP push per element.
        sig = 0.5 * (1.0 + jnp.tanh(0.5 * gate))
        act = gate * sig * up                                 # SiLU(gate)*up
        # Apply the per-token routing weight on the narrow tensor before the
        # down projection, then cast to bf16 for the MXU.
        act = (dw_ref[0] * act).astype(jnp.bfloat16)
        acc_ref[...] += jnp.dot(act, w2_ref[0],
                                preferred_element_type=jnp.float32)

    @pl.when((e == pl.num_programs(1) - 1) & (d == pl.num_programs(2) - 1))
    def _finalize():
        out_ref[...] = acc_ref[...].astype(out_ref.dtype)


def moe_ffn(x_flat, w1_stack, w2_stack, dense_w, n_active, active_ids, *,
            token_tile, d_tile):
    """out[t] = sum_e dense_w[e, t] * ExpertFFN_e(x[t]).

    x_flat:     (T_pad, H)           bf16
    w1_stack:   (E_tot, 2, H, D)     bf16   ([gate ; up], pre-transposed x @ W)
    w2_stack:   (E_tot, D, H)        bf16
    dense_w:    (E_tot, T_pad, 1)    f32
    n_active:   (1,)                 int32  (# experts with >=1 routed token)
    active_ids: (E_tot,)             int32  (active expert ids first, padded)
    """
    E_tot, _, H, D = w1_stack.shape
    T_pad = x_flat.shape[0]
    tm = token_tile
    dk = d_tile
    nd = D // dk
    assert T_pad % tm == 0 and tm % 8 == 0 and D % dk == 0

    vmem_est = _vmem_bytes_est(tm, H, dk)
    budget = _vmem_budget_bytes()
    vmem_limit = int(min(budget, max(2 * vmem_est, 32 * 2**20)))
    vmem_limit = max(vmem_limit, vmem_est)

    def _d_idx(e, d, nact):
        # Freeze the D-tile index on dead (padded) expert slots so their
        # weight block index never changes -> the pipeline elides the DMA.
        return jnp.where(e < nact[0], d, nd - 1)

    return pl.pallas_call(
        _moe_ffn_kernel,
        out_shape=jax.ShapeDtypeStruct((T_pad, H), jnp.bfloat16),
        grid_spec=pltpu.PrefetchScalarGridSpec(
            num_scalar_prefetch=2,                 # n_active, active_ids -> SMEM
            grid=(T_pad // tm, E_tot, nd),
            in_specs=[
                pl.BlockSpec((tm, H), lambda t, e, d, n, a: (t, 0)),        # x
                pl.BlockSpec((1, 2, H, dk),                                 # W1
                             lambda t, e, d, n, a: (a[e], 0, 0, _d_idx(e, d, n))),
                pl.BlockSpec((1, dk, H),                                    # W2
                             lambda t, e, d, n, a: (a[e], _d_idx(e, d, n), 0)),
                pl.BlockSpec((1, tm, 1),                                    # dw
                             lambda t, e, d, n, a: (a[e], t, 0)),
            ],
            out_specs=pl.BlockSpec((tm, H), lambda t, e, d, n, a: (t, 0)),
            scratch_shapes=[pltpu.VMEM((tm, H), jnp.float32)],
        ),
        compiler_params=pltpu.CompilerParams(
            dimension_semantics=("parallel", "arbitrary", "arbitrary"),
            vmem_limit_bytes=vmem_limit),
    )(n_active, active_ids, x_flat, w1_stack, w2_stack, dense_w)


# ----------------------------------------------------------------------------
# One-time weight repack (done outside the hot path):
#   - pack gate/up into one stacked tensor per expert,
#   - split the shared expert into n_shared width-D virtual experts (exact),
#   - stack routed + shared and cast to bf16.
# ----------------------------------------------------------------------------
def prepare_moe_weights(params, config):
    H = config["d_hidden"]
    D = config["d_expert"]
    S = config["n_shared_experts"]

    w1_routed = jnp.stack([params["Wg_routed"], params["Wu_routed"]], axis=1)
    w2_routed = params["Wd_routed"]                                    # (E,D,H)

    wg_s = params["Wg_shared"][0].reshape(H, S, D).transpose(1, 0, 2)  # (S,H,D)
    wu_s = params["Wu_shared"][0].reshape(H, S, D).transpose(1, 0, 2)
    wd_s = params["Wd_shared"][0].reshape(S, D, H)                     # (S,D,H)
    w1_shared = jnp.stack([wg_s, wu_s], axis=1)                        # (S,2,H,D)

    return {
        "W1_stack": jnp.concatenate([w1_routed, w1_shared], 0).astype(jnp.bfloat16),
        "W2_stack": jnp.concatenate([w2_routed, wd_s], 0).astype(jnp.bfloat16),
        "W_g": params["W_g"].astype(jnp.float32),
    }


# ----------------------------------------------------------------------------
# Full MoE forward (gating glue in JAX, all expert FFNs in one Pallas call).
# ----------------------------------------------------------------------------
def moe_forward(x, prepped, config, token_tile=None):
    bsz, seq_len, hidden = x.shape
    topk = config["n_experts_per_token"]
    n_routed = config["n_routed_experts"]
    n_shared = config["n_shared_experts"]
    n_total = n_routed + n_shared
    D = config["d_expert"]

    x_flat = x.reshape(-1, hidden).astype(jnp.float32)
    T = x_flat.shape[0]

    # --- gating network (tiny; plain JAX glue) -----------------------------
    # TODO(synk): top-k has no clean Pallas equivalent; gating stays in JAX.
    logits = x_flat @ prepped["W_g"].T                       # (T, E)
    scores = jax.nn.softmax(logits, axis=-1)
    topk_scores, topk_ids = jax.lax.top_k(scores, topk)      # (T, k)

    # --- token / expert-dim tiling -----------------------------------------
    dk = _pick_expert_tile(D)
    budget = _vmem_budget_bytes()
    if token_tile is None:
        tm = min(512, _round_up(T, 8))
    else:
        tm = min(_round_up(token_tile, 8), _round_up(T, 8))
    while tm > 8 and _vmem_bytes_est(tm, hidden, dk) > budget:
        tm = max(8, (tm // 2) - ((tm // 2) % 8))
    T_pad = _round_up(T, tm)

    x_pad = jnp.zeros((T_pad, hidden), jnp.bfloat16).at[:T].set(
        x_flat.astype(jnp.bfloat16))

    # Densify routing weights -> (E_total, T_pad, 1); the shared virtual
    # experts (last n_shared rows) get weight 1.0 for every real token.
    dense_w = jnp.zeros((T_pad, n_total), dtype=jnp.float32)
    dense_w = dense_w.at[jnp.arange(T)[:, None], topk_ids].add(topk_scores)
    dense_w = dense_w.at[:T, n_routed:].set(1.0)
    counts = jnp.sum(dense_w > 0.0, axis=0).astype(jnp.int32)   # (E_total,)
    dense_w = dense_w.T.reshape(n_total, T_pad, 1)

    # Compact the expert axis: active experts first (so their weight DMAs are
    # the only ones streamed), trailing slots repeat the last active expert.
    active = counts > 0                                  # shared always True
    n_active = jnp.sum(active.astype(jnp.int32))
    order = jnp.argsort((~active).astype(jnp.int32))     # active first
    clamp = jnp.minimum(jnp.arange(n_total), jnp.maximum(n_active - 1, 0))
    active_ids = order[clamp].astype(jnp.int32)
    n_active_arr = jnp.reshape(n_active, (1,)).astype(jnp.int32)

    out = moe_ffn(x_pad, prepped["W1_stack"], prepped["W2_stack"],
                  dense_w, n_active_arr, active_ids,
                  token_tile=tm, d_tile=dk)

    # Kernel emits bf16 (halved HBM writeback); restore caller dtype outside.
    return out[:T].astype(x.dtype).reshape(bsz, seq_len, hidden)


# ----------------------------------------------------------------------------
# Pure-JAX reference (mirrors the PyTorch moe_infer / Expert math).
# `matmul_dtype=bf16` matches the kernel's MXU operand precision (f32 accum).
# ----------------------------------------------------------------------------
def moe_forward_ref(x, params, config, matmul_dtype=jnp.float32):
    bsz, seq_len, hidden = x.shape
    topk = config["n_experts_per_token"]
    n_exp = config["n_routed_experts"]

    x_flat = x.reshape(-1, hidden)

    def mm(a, b):
        return jnp.dot(a.astype(matmul_dtype), b.astype(matmul_dtype),
                       preferred_element_type=jnp.float32)

    def expert(xf, wg, wu, wd):  # wg/wu: (H, D)  wd: (D, H)
        g = mm(xf, wg)
        u = mm(xf, wu)
        return mm(jax.nn.silu(g) * u, wd)

    logits = x_flat @ params["W_g"].T
    scores = jax.nn.softmax(logits, axis=-1)
    topk_scores, topk_ids = jax.lax.top_k(scores, topk)

    routed = jnp.zeros_like(x_flat)
    for e in range(n_exp):
        w_e = jnp.sum(jnp.where(topk_ids == e, topk_scores, 0.0),
                      axis=-1, keepdims=True)
        out_e = expert(x_flat, params["Wg_routed"][e],
                       params["Wu_routed"][e], params["Wd_routed"][e])
        routed = routed + w_e * out_e

    shared = expert(x_flat, params["Wg_shared"][0],
                    params["Wu_shared"][0], params["Wd_shared"][0])

    return (routed + shared).reshape(bsz, seq_len, hidden)


# ----------------------------------------------------------------------------
# Deterministic parameter init (shapes follow the nn.Module __init__).
# ----------------------------------------------------------------------------
def init_params(key, config):
    H = config["d_hidden"]
    D = config["d_expert"]
    E = config["n_routed_experts"]
    Ds = config["d_expert"] * config["n_shared_experts"]

    keys = jax.random.split(key, 8)
    scale = 0.02

    def rand(k, shape):
        return (scale * jax.random.normal(k, shape)).astype(jnp.float32)

    # nn.Linear weight is (out, in); stored pre-transposed for x @ W.
    return {
        "Wg_routed": rand(keys[0], (E, H, D)),
        "Wu_routed": rand(keys[1], (E, H, D)),
        "Wd_routed": rand(keys[2], (E, D, H)),
        "Wg_shared": rand(keys[3], (1, H, Ds)),
        "Wu_shared": rand(keys[4], (1, H, Ds)),
        "Wd_shared": rand(keys[5], (1, Ds, H)),
        "W_g": rand(keys[6], (E, H)),
    }


if __name__ == "__main__":
    config = {
        "d_hidden": 32,
        "d_expert": 16,
        "n_routed_experts": 4,
        "n_experts_per_token": 2,
        "n_shared_experts": 2,
    }
    bsz, seq_len = 2, 8

    key = jax.random.PRNGKey(0)
    k_params, k_x = jax.random.split(key)
    params = init_params(k_params, config)
    x = jax.random.normal(
        k_x, (bsz, seq_len, config["d_hidden"]), dtype=jnp.float32)

    prepped = prepare_moe_weights(params, config)

    fwd = jax.jit(functools.partial(moe_forward, config=config))
    out = jax.block_until_ready(fwd(x, prepped))
    out_np = np.asarray(out)

    # Primary check: against a reference with matched bf16 matmul operands
    # (tolerance covers the bf16 output cast + weight-application reorder).
    ref_bf16 = moe_forward_ref(x, params, config, matmul_dtype=jnp.bfloat16)
    np.testing.assert_allclose(out_np, np.asarray(ref_bf16),
                               rtol=1e-2, atol=1e-4)

    # Sanity check: against the full-f32 reference (looser tolerance for the
    # bf16 MXU operands / bf16 output).
    ref_f32 = moe_forward_ref(x, params, config, matmul_dtype=jnp.float32)
    np.testing.assert_allclose(out_np, np.asarray(ref_f32),
                               rtol=3e-2, atol=3e-4)

    # Exercise the multi-token-tile path (grid token axis > 1) as well.
    fwd_small = jax.jit(functools.partial(moe_forward, config=config,
                                          token_tile=8))
    out_small = jax.block_until_ready(fwd_small(x, prepped))
    np.testing.assert_allclose(np.asarray(out_small), np.asarray(ref_bf16),
                               rtol=1e-2, atol=1e-4)

    print("KERNEL_OK")
</pallas_src>

<mosaic_0001>
module attributes {stable_mosaic.version = 11 : i64} {
  func.func @_moe_ffn_kernel(%arg0: i32, %arg1: i32, %arg2: i32, %arg3: memref<1xi32, #tpu.memory_space<smem>>, %arg4: memref<6xi32, #tpu.memory_space<smem>>, %arg5: memref<16x32xbf16, #tpu.memory_space<vmem>>, %arg6: memref<1x2x32x16xbf16, #tpu.memory_space<vmem>>, %arg7: memref<1x16x32xbf16, #tpu.memory_space<vmem>>, %arg8: memref<1x16x1xf32, #tpu.memory_space<vmem>>, %arg9: memref<16x32xbf16, #tpu.memory_space<vmem>>, %arg10: memref<16x32xf32, #tpu.memory_space<vmem>>) attributes {dimension_semantics = [#tpu.dimension_semantics<parallel>, #tpu.dimension_semantics<arbitrary>, #tpu.dimension_semantics<arbitrary>], iteration_bounds = array<i64: 1, 6, 1>, scalar_prefetch = 2 : i64, scratch_operands = 1 : i64, tpu.core_type = #tpu.core_type<tc>, window_params = [{transform_indices = @transform_0, window_bounds = array<i64: 16, 32>}, {transform_indices = @transform_1, window_bounds = array<i64: 1, 2, 32, 16>}, {transform_indices = @transform_2, window_bounds = array<i64: 1, 16, 32>}, {transform_indices = @transform_3, window_bounds = array<i64: 1, 16, 1>}, {transform_indices = @transform_4, window_bounds = array<i64: 16, 32>}]} {
    %c0_i32 = arith.constant 0 : i32
    %0 = arith.cmpi eq, %arg1, %c0_i32 : i32
    %c0_i32_0 = arith.constant 0 : i32
    %1 = arith.cmpi eq, %arg2, %c0_i32_0 : i32
    %2 = arith.andi %0, %1 : i1
    %3 = arith.extui %2 : i1 to i32
    %c0_i32_1 = arith.constant 0 : i32
    %4 = arith.cmpi ne, %3, %c0_i32_1 : i32
    scf.if %4 {
      %cst = arith.constant 0.000000e+00 : f32
      %14 = vector.broadcast %cst : f32 to vector<16x32xf32>
      %c0_5 = arith.constant 0 : index
      %c0_6 = arith.constant 0 : index
      %15 = vector.load %arg10[%c0_5, %c0_6] : memref<16x32xf32, #tpu.memory_space<vmem>>, vector<16x32xf32>
      tpu.vector_store %arg10[%c0_5, %c0_6], %14 {strides = array<i32>} : memref<16x32xf32, #tpu.memory_space<vmem>>, vector<16x32xf32>,
    } else {
    }
    %c0 = arith.constant 0 : index
    %5 = memref.load %arg3[%c0] : memref<1xi32, #tpu.memory_space<smem>>
    %6 = arith.cmpi slt, %arg1, %5 : i32
    %7 = arith.extui %6 : i1 to i32
    %c0_i32_2 = arith.constant 0 : i32
    %8 = arith.cmpi ne, %7, %c0_i32_2 : i32
    scf.if %8 {
      %c0_5 = arith.constant 0 : index
      %c0_6 = arith.constant 0 : index
      %14 = vector.load %arg5[%c0_5, %c0_6] : memref<16x32xbf16, #tpu.memory_space<vmem>>, vector<16x32xbf16>
      %c0_7 = arith.constant 0 : index
      %c0_8 = arith.constant 0 : index
      %c0_9 = arith.constant 0 : index
      %c0_10 = arith.constant 0 : index
      %15 = vector.load %arg6[%c0_7, %c0_8, %c0_9, %c0_10] : memref<1x2x32x16xbf16, #tpu.memory_space<vmem>>, vector<1x1x32x16xbf16>
      %16 = vector.shape_cast %15 : vector<1x1x32x16xbf16> to vector<32x16xbf16>
      %cst = arith.constant dense<0.000000e+00> : vector<16x16xf32>
      %17 = tpu.matmul %14, %16, %cst {dimension_numbers = #tpu.dot_dimension_numbers<[1], [0], [0], [1], [0, 0, 1, 1], [], []>} : vector<16x32xbf16>, vector<32x16xbf16>, vector<16x16xf32> -> vector<16x16xf32>
      %c0_11 = arith.constant 0 : index
      %c1 = arith.constant 1 : index
      %c0_12 = arith.constant 0 : index
      %c0_13 = arith.constant 0 : index
      %18 = vector.load %arg6[%c0_11, %c1, %c0_12, %c0_13] : memref<1x2x32x16xbf16, #tpu.memory_space<vmem>>, vector<1x1x32x16xbf16>
      %19 = vector.shape_cast %18 : vector<1x1x32x16xbf16> to vector<32x16xbf16>
      %cst_14 = arith.constant dense<0.000000e+00> : vector<16x16xf32>
      %20 = tpu.matmul %14, %19, %cst_14 {dimension_numbers = #tpu.dot_dimension_numbers<[1], [0], [0], [1], [0, 0, 1, 1], [], []>} : vector<16x32xbf16>, vector<32x16xbf16>, vector<16x16xf32> -> vector<16x16xf32>
      %cst_15 = arith.constant 5.000000e-01 : f32
      %21 = vector.broadcast %cst_15 : f32 to vector<16x16xf32>
      %22 = arith.mulf %21, %17 : vector<16x16xf32>
      %23 = math.tanh %22 : vector<16x16xf32>
      %cst_16 = arith.constant 1.000000e+00 : f32
      %24 = vector.broadcast %cst_16 : f32 to vector<16x16xf32>
      %25 = arith.addf %24, %23 : vector<16x16xf32>
      %cst_17 = arith.constant 5.000000e-01 : f32
      %26 = vector.broadcast %cst_17 : f32 to vector<16x16xf32>
      %27 = arith.mulf %26, %25 : vector<16x16xf32>
      %28 = arith.mulf %17, %27 : vector<16x16xf32>
      %29 = arith.mulf %28, %20 : vector<16x16xf32>
      %c0_18 = arith.constant 0 : index
      %c0_19 = arith.constant 0 : index
      %c0_20 = arith.constant 0 : index
      %30 = vector.load %arg8[%c0_18, %c0_19, %c0_20] : memref<1x16x1xf32, #tpu.memory_space<vmem>>, vector<1x16x1xf32>
      %31 = vector.shape_cast %30 : vector<1x16x1xf32> to vector<16x1xf32>
      %32 = vector.broadcast %31 : vector<16x1xf32> to vector<16x16xf32>
      %33 = arith.mulf %32, %29 : vector<16x16xf32>
      %34 = arith.truncf %33 : vector<16x16xf32> to vector<16x16xbf16>
      %c0_21 = arith.constant 0 : index
      %c0_22 = arith.constant 0 : index
      %35 = vector.load %arg10[%c0_21, %c0_22] : memref<16x32xf32, #tpu.memory_space<vmem>>, vector<16x32xf32>
      %c0_23 = arith.constant 0 : index
      %c0_24 = arith.constant 0 : index
      %c0_25 = arith.constant 0 : index
      %36 = vector.load %arg7[%c0_23, %c0_24, %c0_25] : memref<1x16x32xbf16, #tpu.memory_space<vmem>>, vector<1x16x32xbf16>
      %37 = vector.shape_cast %36 : vector<1x16x32xbf16> to vector<16x32xbf16>
      %cst_26 = arith.constant dense<0.000000e+00> : vector<16x32xf32>
      %38 = tpu.matmul %34, %37, %cst_26 {dimension_numbers = #tpu.dot_dimension_numbers<[1], [0], [0], [1], [0, 0, 1, 1], [], []>} : vector<16x16xbf16>, vector<16x32xbf16>, vector<16x32xf32> -> vector<16x32xf32>
      %39 = arith.addf %35, %38 : vector<16x32xf32>
      %c0_27 = arith.constant 0 : index
      %c0_28 = arith.constant 0 : index
      %40 = vector.load %arg10[%c0_27, %c0_28] : memref<16x32xf32, #tpu.memory_space<vmem>>, vector<16x32xf32>
      tpu.vector_store %arg10[%c0_27, %c0_28], %39 {strides = array<i32>} : memref<16x32xf32, #tpu.memory_space<vmem>>, vector<16x32xf32>,
    } else {
    }
    %c5_i32 = arith.constant 5 : i32
    %9 = arith.cmpi eq, %arg1, %c5_i32 : i32
    %c0_i32_3 = arith.constant 0 : i32
    %10 = arith.cmpi eq, %arg2, %c0_i32_3 : i32
    %11 = arith.andi %9, %10 : i1
    %12 = arith.extui %11 : i1 to i32
    %c0_i32_4 = arith.constant 0 : i32
    %13 = arith.cmpi ne, %12, %c0_i32_4 : i32
    scf.if %13 {
      %c0_5 = arith.constant 0 : index
      %c0_6 = arith.constant 0 : index
      %14 = vector.load %arg10[%c0_5, %c0_6] : memref<16x32xf32, #tpu.memory_space<vmem>>, vector<16x32xf32>
      %15 = arith.truncf %14 : vector<16x32xf32> to vector<16x32xbf16>
      %c0_7 = arith.constant 0 : index
      %c0_8 = arith.constant 0 : index
      %16 = vector.load %arg9[%c0_7, %c0_8] : memref<16x32xbf16, #tpu.memory_space<vmem>>, vector<16x32xbf16>
      tpu.vector_store %arg9[%c0_7, %c0_8], %15 {strides = array<i32>} : memref<16x32xbf16, #tpu.memory_space<vmem>>, vector<16x32xbf16>,
    } else {
    }
    return
  }
  func.func @transform_0(%arg0: i32, %arg1: i32, %arg2: i32, %arg3: memref<1xi32, #tpu.memory_space<smem>>, %arg4: memref<6xi32, #tpu.memory_space<smem>>) -> (i32, i32) {
    %c0_i32 = arith.constant 0 : i32
    %c0_i32_0 = arith.constant 0 : i32
    return %arg0, %c0_i32 : i32, i32
  }
  func.func @transform_1(%arg0: i32, %arg1: i32, %arg2: i32, %arg3: memref<1xi32, #tpu.memory_space<smem>>, %arg4: memref<6xi32, #tpu.memory_space<smem>>) -> (i32, i32, i32, i32) {
    %0 = arith.index_cast %arg1 : i32 to index
    %1 = memref.load %arg4[%0] : memref<6xi32, #tpu.memory_space<smem>>
    %c0 = arith.constant 0 : index
    %2 = memref.load %arg3[%c0] : memref<1xi32, #tpu.memory_space<smem>>
    %3 = arith.cmpi slt, %arg1, %2 : i32
    %c0_i32 = arith.constant 0 : i32
    %4 = arith.select %3, %arg2, %c0_i32 : i32
    %c0_i32_0 = arith.constant 0 : i32
    %c0_i32_1 = arith.constant 0 : i32
    %c0_i32_2 = arith.constant 0 : i32
    return %1, %c0_i32_0, %c0_i32_1, %4 : i32, i32, i32, i32
  }
  func.func @transform_2(%arg0: i32, %arg1: i32, %arg2: i32, %arg3: memref<1xi32, #tpu.memory_space<smem>>, %arg4: memref<6xi32, #tpu.memory_space<smem>>) -> (i32, i32, i32) {
    %0 = arith.index_cast %arg1 : i32 to index
    %1 = memref.load %arg4[%0] : memref<6xi32, #tpu.memory_space<smem>>
    %c0 = arith.constant 0 : index
    %2 = memref.load %arg3[%c0] : memref<1xi32, #tpu.memory_space<smem>>
    %3 = arith.cmpi slt, %arg1, %2 : i32
    %c0_i32 = arith.constant 0 : i32
    %4 = arith.select %3, %arg2, %c0_i32 : i32
    %c0_i32_0 = arith.constant 0 : i32
    %c0_i32_1 = arith.constant 0 : i32
    return %1, %4, %c0_i32_0 : i32, i32, i32
  }
  func.func @transform_3(%arg0: i32, %arg1: i32, %arg2: i32, %arg3: memref<1xi32, #tpu.memory_space<smem>>, %arg4: memref<6xi32, #tpu.memory_space<smem>>) -> (i32, i32, i32) {
    %0 = arith.index_cast %arg1 : i32 to index
    %1 = memref.load %arg4[%0] : memref<6xi32, #tpu.memory_space<smem>>
    %c0_i32 = arith.constant 0 : i32
    %c0_i32_0 = arith.constant 0 : i32
    return %1, %arg0, %c0_i32 : i32, i32, i32
  }
  func.func @transform_4(%arg0: i32, %arg1: i32, %arg2: i32, %arg3: memref<1xi32, #tpu.memory_space<smem>>, %arg4: memref<6xi32, #tpu.memory_space<smem>>) -> (i32, i32) {
    %c0_i32 = arith.constant 0 : i32
    %c0_i32_0 = arith.constant 0 : i32
    return %arg0, %c0_i32 : i32, i32
  }
}

</mosaic_0001>

<bundles_post_ra>
// kernel: moe_forward.1
= control target key start
LH: loop header
LB: loop body
LE: loop exit
PB: predicated region body
PF: predicated region fallthrough
CT: control target
= control target key end

     0   :  { %s807_s26 = smov [#allocation5]   ;;  %s913_s0 = inlined_call_operand.<no memory space> [shape: s32[1], index: 0, kind: input, shape index: {}]   ;;  %s914_s1 = inlined_call_operand.vmem [shape: s32[6], index: 1, kind: input, shape index: {}]   ;;  %s915_s2 = inlined_call_operand.vmem [shape: bf16[16,32], index: 2, kind: input, shape index: {}]   ;;  %s916_s3 = inlined_call_operand.vmem [shape: bf16[6,2,32,16], index: 3, kind: input, shape index: {}]   ;;  %s917_s4 = inlined_call_operand.vmem [shape: bf16[6,16,32], index: 4, kind: input, shape index: {}]   ;;  %s918_s5 = inlined_call_operand.vmem [shape: f32[6,16,1], index: 5, kind: input, shape index: {}]   ;;  %s919_s6 = inlined_call_operand.vmem [shape: bf16[16,32], index: 6, kind: output, shape index: {}]  }
   0x1   :  { %11 = sst [smem:[#allocation4]] %s913_s0  ;;  %s13_s25 = sshll.u32 %s914_s1, 4  ;;  %s14_s25 = int_to_ptr.vmem [resolvable:$true] %s13_s25 }
   0x2   :  { %16 = dma.vmem_to_smem %s14_s25, 16, %s807_s26, [#allocation3] }
   0x3   :  { %793 = dma.done.wait [#allocation3], 16 }
   0x4   :  { %794 = vsyncadd [#allocation3], 4294967280 }
   0x5   :  { %19 = sfence }
   0x6   :  { %s851_s27 = smov 0   ;;  %s853_s28 = smov 0  }
   0x7   :  { %s855_s29 = smov 0  }
   0x8 LB: > { %s40_s0 = sadd.s32 1, %s801_s28  ;;  %p681_p0 = scmp.ge.s32.totalorder %s805_s29, 1  ;;  %s805_s29 = sphi %s855_s29, %s25_s29   ;;  %s801_s28 = sphi %s853_s28, %s921_s28   ;;  %s797_s27 = sphi %s851_s27, %s920_s27  }
   0x9   : > { %p42_p1 = scmp.ge.s32.totalorder %s40_s0, 6  ;;  %p278_p2 = scmp.lt.s32.totalorder %s805_s29, 7 }
   0xb   : > { %s923_s0 = smov (%p42_p1, %s40_s0), 0  ;;  %p279_p3 = pnand %p681_p0, %p278_p2 }
   0xc   : > { %s345_s1 = sld [smem:[#allocation5 + %s797_s27]] (!%p279_p3)  ;;  %p398_p4 = scmp.eq.s32.totalorder (!%p279_p3), %s797_s27, 0 }
   0xd   : > { %282 = sbr.rel (%p279_p3) target bundleno = 358 (0x166), region = 36  ;;  %s361_s30 = sld [smem:[#allocation5 + %s797_s27]] (!%p279_p3) }
   0xe   : > { %s379_s7 = sld [smem:[#allocation5 + %s797_s27]] (!%p279_p3) }
  0x12   : > { %p349_p5 = scmp.lt.s32.totalorder %s345_s1, 5  ;;  %vm404_vm0 = vcmask (%p398_p4), 261120   ;;  %v808_v0 = vmov (%p398_p4), 0.0  }
  0x13   : > { %p366_p6 = scmp.lt.s32.totalorder %s361_s30, 5  ;;  %405 = vst.msk [vmem:[#allocation2] sm:$0xff] (%p398_p4), %vm404_vm0, %v808_v0 }
  0x14   : > { %s925_s1 = smov (!%p349_p5, %s345_s1), 5  ;;  %p381_p7 = scmp.lt.s32.totalorder %s379_s7, 5  ;;  %406 = vst.msk [vmem:[#allocation2 + $0x8] sm:$0xff] (%p398_p4), %vm404_vm0, %v808_v0 }
  0x15   : > { %s927_s30 = smov (!%p366_p6, %s361_s30), 5  ;;  %s726_s8 = sshll.u32 %s925_s1, 5 }
  0x16   : > { %s356_s11 = scalar_lea.vmem %s916_s3, %s726_s8  ;;  %s727_s12 = sshll.u32 %s927_s30, 3 }
  0x17   : > { %s881_s15 = scalar_lea.vmem %s917_s4, %s727_s12  ;;  %s929_s7 = smov (!%p381_p7, %s379_s7), 5 }
  0x18   : > { %s728_s16 = sshll.u32 %s929_s7, 4  ;;  %403 = sbr.rel (!%p398_p4) target bundleno = 29 (0x1d), region = 40 }
  0x19   : > { %s388_s19 = scalar_lea.vmem %s918_s5, %s728_s16 }
  0x1d PF: > { %s407_s20 = sld [smem:[#allocation4]] }
  0x23   : > { %p689_p8 = scmp.ge.s32.totalorder %s797_s27, %s407_s20 }
  0x25   : > { %411 = sbr.rel (%p689_p8) target bundleno = 348 (0x15c), region = 44 }
  0x2a   : > { %v732_v1 = vld [vmem:[%s356_s11 + $0x8] sm:$0xff]  ;;  %v734_v2 = vld [vmem:[%s356_s11 + $0x18] sm:$0xff]  ;;  %v809_v3 = vmov 0   ;;  %v496_v4 = vld [vmem:[%s388_s19] sm:$0xff]  ;;  %vm435_vm1 = vcmask 261120   ;;  %vm521_vm2 = vcmask 130048  }
  0x2b   : > { %764 = vset.pattern.permute.xlu0 %v809_v3  ;;  %445 = vmatpush.bf16.msra.mxu0 %v732_v1  ;;  %v731_v5 = vld [vmem:[%s356_s11] sm:$0xff]  ;;  %v733_v6 = vld [vmem:[%s356_s11 + $0x10] sm:$0xff]  ;;  %v497_v8 = vld [vmem:[%s388_s19 + $0x8] sm:$0xff] }
  0x2c   : > { %500 = vperm.xlu0 %764, %v496_v4   ;;  %476 = vmatpush.bf16.msra.mxu1 %v734_v2  ;;  %v730_v7 = vld [vmem:[%s915_s2] sm:$0xff]  ;;  %v512_v34 = vld [vmem:[#allocation2 + $0x8] sm:$0xff] }
  0x2d   : > { %v735_v9 = vld [vmem:[%s881_s15] sm:$0xff] }
  0x2e   : > { %532 = vmatpush.bf16.msra.mxu2 %v735_v9  ;;  %v511_v31 = vld [vmem:[#allocation2] sm:$0xff] }
  0x2f   : > { %446 = vmatpush.bf16.msra.mxu0 %v731_v5 }
  0x30   : > { %477 = vmatpush.bf16.msra.mxu1 %v733_v6 }
  0x32   : > { %702 = vmatmul.msk.bf16.vlgmr.msra.gmra.mxu0 %vm435_vm1, %v730_v7 }
  0x33   : > { %715 = vmatmul.msk.bf16.vlgmr.msra.gmra.mxu1 %vm435_vm1, %v730_v7 }
  0x34   : > { %505 = vperm.xlu0 %764, %v497_v8  }
  0x9e   : > { %v501_v18 = vpop.permute.xlu0 %500 }
  0xa6   : > { %v506_v27 = vpop.permute.xlu0 %505 }
  0xaf   : > { %v448_v10 = vpop.f32.mrf.mxu0 }
  0xb0   : > { %v484_v11 = vmul.f32 0.5, %v448_v10  ;;  %v479_v16 = vpop.f32.mrf.mxu1 }
  0xb2   : > { %765 = vtanh.f32 %v484_v11 }
  0xb7   : > { %v450_v12 = vpop.f32.mrf.mxu0 }
  0xb8   : > { %v766_v13 = vpop.eup %765  ;;  %v485_v14 = vmul.f32 0.5, %v450_v12  ;;  %v481_v25 = vpop.f32.mrf.mxu1 }
  0xb9   : > { %v488_v15 = vadd.f32 1.0, %v766_v13 }
  0xba   : > { %767 = vtanh.f32 %v485_v14 }
  0xbb   : > { %v490_v17 = vmul.f32 0.5, %v488_v15 }
  0xbd   : > { %v492_v20 = vmul.f32 %v490_v17, %v448_v10 }
  0xbf   : > { %v494_v23 = vmul.f32 %v492_v20, %v479_v16 }
  0xc0   : > { %v768_v19 = vpop.eup %767 }
  0xc1   : > { %v489_v21 = vadd.f32 1.0, %v768_v19  ;;  %v508_v28 = vmul.f32 %v501_v18, %v494_v23 }
  0xc3   : > { %v491_v22 = vmul.f32 0.5, %v489_v21 }
  0xc5   : > { %v493_v24 = vmul.f32 %v491_v22, %v450_v12 }
  0xc7   : > { %v495_v26 = vmul.f32 %v493_v24, %v481_v25 }
  0xc9   : > { %v509_v29 = vmul.f32 %v506_v27, %v495_v26 }
  0xcb   : > { %v510_v30 = vpack.c.bf16 %v509_v29, %v508_v28 }
  0xcd   : > { %720 = vmatmul.msk.bf16.vlgmr.msra.gmra.mxu2 %vm521_vm2, %v510_v30 }
 0x150   : > { %v534_v32 = vpop.f32.mrf.mxu2 }
 0x151   : > { %v539_v33 = vadd.f32 %v534_v32, %v511_v31 }
 0x153   : > { %541 = vst.msk [vmem:[#allocation2] sm:$0xff] %vm435_vm1, %v539_v33 }
 0x158   : > { %v536_v35 = vpop.f32.mrf.mxu2 }
 0x159   : > { %v540_v36 = vadd.f32 %v536_v35, %v512_v34 }
 0x15b   : > { %542 = vst.msk [vmem:[#allocation2 + $0x8] sm:$0xff] %vm435_vm1, %v540_v36 }
 0x15c PF: > { %p543_p9 = scmp.eq.s32.totalorder %s797_s27, 5 }
 0x15d   : > { %v548_v37 = vld [vmem:[#allocation2] sm:$0xff] (%p543_p9)  ;;  %vm552_vm3 = vcmask (%p543_p9), 257024  }
 0x15e   : > { %547 = sbr.rel (!%p543_p9) target bundleno = 358 (0x166), region = 48  ;;  %v550_v39 = vpack.c.bf16 (%p543_p9), %v548_v37, %v548_v37 }
 0x160   : > { %553 = vst.msk [vmem:[%s919_s6] sm:$0xf] (%p543_p9), %vm552_vm3, %v550_v39 }
 0x162   : > { %v549_v38 = vld [vmem:[#allocation2 + $0x8] sm:$0xff] (%p543_p9) }
 0x163   : > { %v551_v40 = vpack.c.bf16 %v549_v38, %v549_v38 }
 0x165   : > { %554 = vst.msk [vmem:[%s919_s6 + $0x4] sm:$0xf] %vm552_vm3, %v551_v40 }
 0x166 PF: > { %s25_s29 = sadd.s32 1, %s805_s29   ;;  %s920_s27 = smov %s801_s28 }
 0x167   : > { %p22_p10 = scmp.ge.s32.totalorder %s25_s29, 8   ;;  %s921_s28 = smov %s923_s0 }
 0x169   :  { %24 = sbr.rel (!%p22_p10) target bundleno = 8 (0x8), region = 88 }

</bundles_post_ra>
